<compile_context>
chip_gen: v7x
topology: tpu7x:2x2x1
jax: 0.10.0
libtpu: 0.0.40
codegen_flags: <defaults>
</compile_context>

<pallas_src>
import math
import functools
import jax
import jax.numpy as jnp
from jax.experimental import pallas as pl
from jax.experimental.pallas import tpu as pltpu


# ---------------------------------------------------------------------------
# helpers
# ---------------------------------------------------------------------------
def _round_up(x: int, m: int) -> int:
    return ((x + m - 1) // m) * m


def _choose_tile(dim_padded: int, target: int, granule: int) -> int:
    """Largest multiple of `granule` <= target that divides `dim_padded`.

    `dim_padded` is already a multiple of `granule`, so this never adds padding
    beyond the hardware (8/16, 128) granularity.
    """
    if dim_padded <= target:
        return dim_padded
    t = (target // granule) * granule
    while t >= granule:
        if dim_padded % t == 0:
            return t
        t -= granule
    return granule


def _default_tile_config():
    """Generation-aware tile defaults (best effort from device_kind)."""
    try:
        kind = jax.devices()[0].device_kind.lower()
    except Exception:  # pragma: no cover
        kind = ""
    if "v6" in kind:
        # v6e: worst compute:HBM ratio but 128 MiB VMEM -> widest output tiles.
        return dict(tm=1024, tn=2048, tk=512, vmem_limit=64 << 20)
    if "v5" in kind:
        # v5e: slower HBM + single vst slot -> larger tk; scoped default is
        # only 16 MiB, so raise the limit explicitly.
        return dict(tm=1024, tn=1024, tk=1024, vmem_limit=64 << 20)
    # v7x / unknown: 3.2 TB/s HBM reaches roofline at 1024 tiles; only 64 MiB
    # physical VMEM per TensorCore, so stay well under ~48 MiB.
    return dict(tm=1024, tn=1024, tk=512, vmem_limit=48 << 20)


# ---------------------------------------------------------------------------
# kernels
# ---------------------------------------------------------------------------
def _matmul_bias_kernel_direct(x_ref, w_ref, b_ref, o_ref):
    """float32 output: accumulate directly into the resident output block."""
    k = pl.program_id(2)

    @pl.when(k == 0)
    def _init():
        # Bias acts as the accumulator initializer (no extra add later).
        o_ref[...] = jnp.broadcast_to(b_ref[...], o_ref.shape).astype(o_ref.dtype)

    o_ref[...] += jnp.dot(
        x_ref[...], w_ref[...], preferred_element_type=jnp.float32
    )


def _matmul_bias_kernel_scratch(x_ref, w_ref, b_ref, o_ref, acc_ref):
    """Narrow output dtype: f32 VMEM accumulator + cast on the last K step."""
    k = pl.program_id(2)

    @pl.when(k == 0)
    def _init():
        acc_ref[...] = jnp.zeros_like(acc_ref)

    acc_ref[...] += jnp.dot(
        x_ref[...], w_ref[...], preferred_element_type=jnp.float32
    )

    @pl.when(k == pl.num_programs(2) - 1)
    def _finalize():
        o_ref[...] = (acc_ref[...] + b_ref[...]).astype(o_ref.dtype)


# ---------------------------------------------------------------------------
# parameter pre-packing (do once, not per forward call)
# ---------------------------------------------------------------------------
def prepack_params(weight, bias=None, *, use_bf16_matmul=True):
    """Pack TULERNN params into the layout the kernel consumes.

    weight [out_features, in_features] -> w_packed [Kp, Np]   (pre-transposed,
        zero-padded to multiples of 128, optionally cast to bf16)
    bias   [out_features] or None      -> b_packed [1, Np]    (float32)
    """
    N, K = weight.shape
    Kp, Np = _round_up(K, 128), _round_up(N, 128)
    w_packed = jnp.pad(jnp.asarray(weight).T, ((0, Kp - K), (0, Np - N)))
    if use_bf16_matmul:
        w_packed = w_packed.astype(jnp.bfloat16)
    if bias is None:
        b_packed = jnp.zeros((1, Np), jnp.float32)
    else:
        b_packed = jnp.pad(
            jnp.asarray(bias, jnp.float32).reshape(1, N), ((0, 0), (0, Np - N))
        )
    return w_packed, b_packed


# ---------------------------------------------------------------------------
# forward
# ---------------------------------------------------------------------------
def tulernn_forward_packed(x, w_packed, b_packed, *, out_features,
                           use_bf16_matmul=True, tm=None, tn=None, tk=None):
    """x @ W.T + b with pre-packed weight/bias (see prepack_params)."""
    B, K = x.shape
    Kp, Np = w_packed.shape
    assert Kp >= K and Kp % 128 == 0 and Np % 128 == 0, (K, Kp, Np)
    out_dtype = x.dtype

    run_bf16 = use_bf16_matmul or x.dtype == jnp.bfloat16
    m_granule = 16 if run_bf16 else 8          # bf16 packs 16 sublanes per vreg
    Mp = _round_up(B, m_granule)

    cfg = _default_tile_config()
    tm = _choose_tile(Mp, tm or cfg["tm"], m_granule)
    tk = _choose_tile(Kp, tk or cfg["tk"], 128)
    tn = _choose_tile(Np, tn or cfg["tn"], 128)

    # Aligned fast path: only pad x when actually needed.
    xp = x if (Mp, Kp) == (B, K) else jnp.pad(x, ((0, Mp - B), (0, Kp - K)))
    if use_bf16_matmul and xp.dtype != jnp.bfloat16:
        xp = xp.astype(jnp.bfloat16)

    grid = (Mp // tm, Np // tn, Kp // tk)

    in_specs = [
        pl.BlockSpec((tm, tk), lambda i, j, k: (i, k)),   # x
        pl.BlockSpec((tk, tn), lambda i, j, k: (k, j)),   # W.T (pre-packed)
        pl.BlockSpec((1, tn), lambda i, j, k: (0, j)),    # bias, resident over k
    ]
    out_spec = pl.BlockSpec((tm, tn), lambda i, j, k: (i, j))

    direct = jnp.dtype(out_dtype) == jnp.dtype(jnp.float32)
    kernel = _matmul_bias_kernel_direct if direct else _matmul_bias_kernel_scratch
    scratch = [] if direct else [pltpu.VMEM((tm, tn), jnp.float32)]

    bytes_accessed = (
        xp.size * xp.dtype.itemsize
        + w_packed.size * w_packed.dtype.itemsize
        + b_packed.size * b_packed.dtype.itemsize
        + Mp * Np * jnp.dtype(out_dtype).itemsize
    )
    cost = pl.CostEstimate(
        flops=2 * Mp * Np * Kp, transcendentals=0, bytes_accessed=bytes_accessed
    )

    out = pl.pallas_call(
        kernel,
        out_shape=jax.ShapeDtypeStruct((Mp, Np), out_dtype),
        grid_spec=pltpu.PrefetchScalarGridSpec(
            num_scalar_prefetch=0,
            grid=grid,
            in_specs=in_specs,
            out_specs=out_spec,
            scratch_shapes=scratch,
        ),
        compiler_params=pltpu.CompilerParams(
            dimension_semantics=("parallel", "parallel", "arbitrary"),
            vmem_limit_bytes=cfg["vmem_limit"],
        ),
        cost_estimate=cost,
    )(xp, w_packed, b_packed)

    # Aligned fast path: skip the slice when no padding was introduced.
    if (Mp, Np) == (B, out_features):
        return out
    return out[:B, :out_features]


def tulernn_forward(x, weight, bias, threshold=None, *, use_bf16_matmul=True,
                    tm=None, tn=None, tk=None):
    """Convenience one-shot wrapper (packs the weight per call).

    For repeated calls, call prepack_params() once and use
    tulernn_forward_packed() instead.  `threshold` is unused: the masked sum in
    the original module is the identity for finite activations.
    """
    del threshold  # identity transform; see module docstring.
    w_packed, b_packed = prepack_params(weight, bias,
                                        use_bf16_matmul=use_bf16_matmul)
    return tulernn_forward_packed(
        x, w_packed, b_packed, out_features=weight.shape[0],
        use_bf16_matmul=use_bf16_matmul, tm=tm, tn=tn, tk=tk)


# ---------------------------------------------------------------------------
# parameter init (matches the PyTorch reset_parameters)
# ---------------------------------------------------------------------------
def init_params(key, in_features, out_features, dtype=jnp.float32):
    kw, kt, kb = jax.random.split(key, 3)
    w_bound = math.sqrt(6.0 / (in_features + out_features))
    weight = jax.random.uniform(kw, (out_features, in_features), dtype,
                                minval=-w_bound, maxval=w_bound)
    t_bound = math.sqrt(6.0 / (1 + out_features))
    threshold = jax.random.uniform(kt, (out_features, 1), dtype,
                                   minval=-t_bound, maxval=t_bound)
    b_bound = 1.0 / math.sqrt(in_features)
    bias = jax.random.uniform(kb, (out_features,), dtype,
                              minval=-b_bound, maxval=b_bound)
    return weight, bias, threshold


if __name__ == "__main__":
    batch, in_features, out_features = 8, 64, 32
    key = jax.random.PRNGKey(0)
    kx, kp = jax.random.split(key)
    x = jax.random.normal(kx, (batch, in_features), jnp.float32)
    weight, bias, threshold = init_params(kp, in_features, out_features)

    # Pure-JAX reference (the masked sum in the original module equals lin).
    lin_ref = x @ weight.T + bias[None, :]
    mask = lin_ref <= threshold.T
    ref = lin_ref * mask + lin_ref * jnp.logical_not(mask)

    # --- exact (f32 MXU) path -------------------------------------------------
    w32, b32 = prepack_params(weight, bias, use_bf16_matmul=False)
    fwd32 = jax.jit(functools.partial(
        tulernn_forward_packed, out_features=out_features,
        use_bf16_matmul=False))
    out32 = jax.block_until_ready(fwd32(x, w32, b32))
    assert out32.shape == (batch, out_features)
    assert jnp.allclose(out32, ref, atol=1e-5, rtol=1e-5), \
        float(jnp.max(jnp.abs(out32 - ref)))

    # --- fast (bf16 MXU inputs, f32 accumulation) path ------------------------
    wbf, bbf = prepack_params(weight, bias, use_bf16_matmul=True)
    fwdbf = jax.jit(functools.partial(
        tulernn_forward_packed, out_features=out_features,
        use_bf16_matmul=True))
    outbf = jax.block_until_ready(fwdbf(x, wbf, bbf))
    assert outbf.shape == (batch, out_features)
    assert jnp.allclose(outbf, ref, atol=5e-2, rtol=5e-2), \
        float(jnp.max(jnp.abs(outbf - ref)))

    print("KERNEL_OK")
</pallas_src>

<mosaic_0001>
module attributes {stable_mosaic.version = 11 : i64} {
  func.func @_matmul_bias_kernel_direct(%arg0: i32, %arg1: i32, %arg2: i32, %arg3: memref<8x128xf32, #tpu.memory_space<vmem>>, %arg4: memref<128x128xf32, #tpu.memory_space<vmem>>, %arg5: memref<1x128xf32, #tpu.memory_space<vmem>>, %arg6: memref<8x128xf32, #tpu.memory_space<vmem>>) attributes {dimension_semantics = [#tpu.dimension_semantics<parallel>, #tpu.dimension_semantics<parallel>, #tpu.dimension_semantics<arbitrary>], iteration_bounds = array<i64: 1, 1, 1>, scalar_prefetch = 0 : i64, scratch_operands = 0 : i64, tpu.core_type = #tpu.core_type<tc>, window_params = [{transform_indices = @transform_0, window_bounds = array<i64: 8, 128>}, {transform_indices = @transform_1, window_bounds = array<i64: 128, 128>}, {transform_indices = @transform_2, window_bounds = array<i64: 1, 128>}, {transform_indices = @transform_3, window_bounds = array<i64: 8, 128>}]} {
    %c0_i32 = arith.constant 0 : i32
    %0 = arith.cmpi eq, %arg2, %c0_i32 : i32
    %1 = arith.extui %0 : i1 to i32
    %c0_i32_0 = arith.constant 0 : i32
    %2 = arith.cmpi ne, %1, %c0_i32_0 : i32
    scf.if %2 {
      %c0_8 = arith.constant 0 : index
      %c0_9 = arith.constant 0 : index
      %9 = vector.load %arg5[%c0_8, %c0_9] : memref<1x128xf32, #tpu.memory_space<vmem>>, vector<1x128xf32>
      %10 = vector.shape_cast %9 : vector<1x128xf32> to vector<1x128xf32>
      %11 = vector.broadcast %10 : vector<1x128xf32> to vector<8x128xf32>
      %c0_10 = arith.constant 0 : index
      %c0_11 = arith.constant 0 : index
      %12 = vector.load %arg6[%c0_10, %c0_11] : memref<8x128xf32, #tpu.memory_space<vmem>>, vector<8x128xf32>
      tpu.vector_store %arg6[%c0_10, %c0_11], %11 {strides = array<i32>} : memref<8x128xf32, #tpu.memory_space<vmem>>, vector<8x128xf32>,
    } else {
    }
    %c0 = arith.constant 0 : index
    %c0_1 = arith.constant 0 : index
    %3 = vector.load %arg6[%c0, %c0_1] : memref<8x128xf32, #tpu.memory_space<vmem>>, vector<8x128xf32>
    %c0_2 = arith.constant 0 : index
    %c0_3 = arith.constant 0 : index
    %4 = vector.load %arg3[%c0_2, %c0_3] : memref<8x128xf32, #tpu.memory_space<vmem>>, vector<8x128xf32>
    %c0_4 = arith.constant 0 : index
    %c0_5 = arith.constant 0 : index
    %5 = vector.load %arg4[%c0_4, %c0_5] : memref<128x128xf32, #tpu.memory_space<vmem>>, vector<128x128xf32>
    %cst = arith.constant dense<0.000000e+00> : vector<8x128xf32>
    %6 = tpu.matmul %4, %5, %cst {dimension_numbers = #tpu.dot_dimension_numbers<[1], [0], [0], [1], [0, 0, 1, 1], [], []>} : vector<8x128xf32>, vector<128x128xf32>, vector<8x128xf32> -> vector<8x128xf32>
    %7 = arith.addf %3, %6 : vector<8x128xf32>
    %c0_6 = arith.constant 0 : index
    %c0_7 = arith.constant 0 : index
    %8 = vector.load %arg6[%c0_6, %c0_7] : memref<8x128xf32, #tpu.memory_space<vmem>>, vector<8x128xf32>
    tpu.vector_store %arg6[%c0_6, %c0_7], %7 {strides = array<i32>} : memref<8x128xf32, #tpu.memory_space<vmem>>, vector<8x128xf32>,
    return
  }
  func.func @transform_0(%arg0: i32, %arg1: i32, %arg2: i32) -> (i32, i32) {
    %c0_i32 = arith.constant 0 : i32
    return %arg0, %arg2 : i32, i32
  }
  func.func @transform_1(%arg0: i32, %arg1: i32, %arg2: i32) -> (i32, i32) {
    %c0_i32 = arith.constant 0 : i32
    return %arg2, %arg1 : i32, i32
  }
  func.func @transform_2(%arg0: i32, %arg1: i32, %arg2: i32) -> (i32, i32) {
    %c0_i32 = arith.constant 0 : i32
    %c0_i32_0 = arith.constant 0 : i32
    return %c0_i32, %arg1 : i32, i32
  }
  func.func @transform_3(%arg0: i32, %arg1: i32, %arg2: i32) -> (i32, i32) {
    %c0_i32 = arith.constant 0 : i32
    return %arg0, %arg1 : i32, i32
  }
}

</mosaic_0001>

<bundles_post_ra>
// kernel: tulernn_forward_packed.1
= control target key start
LH: loop header
LB: loop body
LE: loop exit
PB: predicated region body
PF: predicated region fallthrough
CT: control target
= control target key end

     0   :  { %8 = vsyncpa [#allocation3], 0  ;;  %s335_s0 = inlined_call_operand.vmem [shape: f32[8,128], index: 0, kind: input, shape index: {}]   ;;  %s336_s1 = inlined_call_operand.hbm [shape: f32[128,128], index: 1, kind: input, shape index: {}]   ;;  %s337_s2 = inlined_call_operand.vmem [shape: f32[1,128], index: 2, kind: input, shape index: {}]   ;;  %s338_s3 = inlined_call_operand.hbm [shape: f32[8,128], index: 3, kind: output, shape index: {}]  }
   0x1   :  { %9 = vsyncpa [#allocation4], 0  ;;  %s278_s12 = smov [#allocation2]   ;;  %s230_s16 = scalar_lea.hbm %s336_s1, 2048 }
   0x2   :  { %s17_s13 = sshll.u32 %s278_s12, 4  ;;  %p231_p0 = scmp.ne.s32.totalorder %s336_s1, %s230_s16  ;;  %s18_s13 = int_to_ptr.vmem [resolvable:$true] %s17_s13 }
   0x3   :  { %p234_p1 = scmp.lt.u32.totalorder %s230_s16, %s336_s1 }
   0x5   :  { %p236_p2 = pnand %p234_p1, %p231_p0 }
   0x7   :  { %239 = shalt.err (!%p236_p2)
}
   0x8   :  { %s240_s21 = scalar_lea.vmem %s18_s13, 2048  ;;  %p245_p4 = scmp.lt.s32.totalorder %s18_s13, %s18_s13 }
   0x9   :  { %p241_p3 = scmp.ne.s32.totalorder %s18_s13, %s240_s21  ;;  %p246_p5 = scmp.lt.s32.totalorder %s240_s21, %s240_s21 }
   0xb   :  { %p247_p6 = por %p246_p5, %p245_p4 }
   0xd   :  { %p248_p7 = pnand %p247_p6, %p241_p3 }
   0xf   :  { %251 = shalt.err (!%p248_p7)
}
  0x10   :  { %s279_s22 = smov 128   ;;  %s280_s23 = smov 8  }
  0x11   :  { %23 = dma.hbm_to_vmem [thread:$0]  %s336_s1, 2048, %s18_s13, [#allocation3], %s279_s22, %s279_s22, %s280_s23  }
  0x12   :  { %274 = dma.done.wait [#allocation3], 2048  }
  0x13   :  { %275 = vsyncadd [#allocation3], 4294965248  ;;  %v281_v0 = vmov 0.0|0.0   ;;  %vm282_vm0 = vmmov 0   ;;  %v283_v1 = vmov 0.0   ;;  %v43_v2 = vld [vmem:[#allocation2] sm:$0xff] }
  0x14   :  { %199 = vmatprep.subr.bf16.mxu0 %v281_v0  ;;  %196 = vmatprep.mubr.msk.f32.mxu0 %vm282_vm0, %v283_v1  ;;  %v44_v3 = vld [vmem:[#allocation2 + $0x8] sm:$0xff]  ;;  %v45_v4 = vld [vmem:[#allocation2 + $0x10] sm:$0xff]  ;;  %v46_v6 = vld [vmem:[#allocation2 + $0x18] sm:$0xff]  ;;  %s284_s29 = smov [#allocation5]  }
  0x15   :  { %v200_v5 = vpack.c.bf16 %v44_v3, %v43_v2  ;;  %v203_v7 = vpack.c.bf16 %v46_v6, %v45_v4  ;;  %v47_v8 = vld [vmem:[#allocation2 + $0x20] sm:$0xff]  ;;  %v48_v9 = vld [vmem:[#allocation2 + $0x28] sm:$0xff]  ;;  %v49_v11 = vld [vmem:[#allocation2 + $0x30] sm:$0xff]  ;;  %s137_s30 = sshll.u32 %s284_s29, 4  ;;  %s138_s30 = int_to_ptr.vmem [resolvable:$true] %s137_s30 }
  0x16   :  { %v206_v10 = vpack.c.bf16 %v48_v9, %v47_v8  ;;  %v50_v12 = vld [vmem:[#allocation2 + $0x38] sm:$0xff]  ;;  %v51_v14 = vld [vmem:[#allocation2 + $0x40] sm:$0xff]  ;;  %v52_v15 = vld [vmem:[#allocation2 + $0x48] sm:$0xff]  ;;  %s252_s4 = scalar_lea.vmem %s138_s30, 128  ;;  %p257_p9 = scmp.lt.s32.totalorder %s138_s30, %s138_s30 }
  0x17   :  { %201 = vmatpush3.bf16.msra.mxu0 %v200_v5  ;;  %v209_v13 = vpack.c.bf16 %v50_v12, %v49_v11  ;;  %v212_v16 = vpack.c.bf16 %v52_v15, %v51_v14  ;;  %v53_v17 = vld [vmem:[#allocation2 + $0x50] sm:$0xff]  ;;  %v54_v18 = vld [vmem:[#allocation2 + $0x58] sm:$0xff]  ;;  %v55_v20 = vld [vmem:[#allocation2 + $0x60] sm:$0xff]  ;;  %p253_p8 = scmp.ne.s32.totalorder %s138_s30, %s252_s4  ;;  %p258_p10 = scmp.lt.s32.totalorder %s252_s4, %s252_s4 }
  0x18   :  { %202 = vmatprep.subr.bf16.mxu0 %v281_v0  ;;  %v215_v19 = vpack.c.bf16 %v54_v18, %v53_v17  ;;  %v56_v21 = vld [vmem:[#allocation2 + $0x68] sm:$0xff]  ;;  %v57_v23 = vld [vmem:[#allocation2 + $0x70] sm:$0xff]  ;;  %v58_v24 = vld [vmem:[#allocation2 + $0x78] sm:$0xff] }
  0x19   :  { %v218_v22 = vpack.c.bf16 %v56_v21, %v55_v20  ;;  %v221_v25 = vpack.c.bf16 %v58_v24, %v57_v23  ;;  %v42_v26 = vld [vmem:[%s335_s0] sm:$0xff]  ;;  %p259_p11 = por %p258_p10, %p257_p9 }
  0x1a   :  { %v146_v27 = vld [vmem:[%s337_s2] ss:$0 sm:$0xff] }
  0x1b   :  { %204 = vmatpush3.bf16.msra.mxu0 %v203_v7  ;;  %p260_p12 = pnand %p259_p11, %p253_p8 }
  0x1c   :  { %205 = vmatprep.subr.bf16.mxu0 %v281_v0 }
  0x1f   :  { %207 = vmatpush3.bf16.msra.mxu0 %v206_v10 }
  0x20   :  { %208 = vmatprep.subr.bf16.mxu0 %v281_v0 }
  0x23   :  { %210 = vmatpush3.bf16.msra.mxu0 %v209_v13 }
  0x24   :  { %211 = vmatprep.subr.bf16.mxu0 %v281_v0 }
  0x27   :  { %213 = vmatpush3.bf16.msra.mxu0 %v212_v16 }
  0x28   :  { %214 = vmatprep.subr.bf16.mxu0 %v281_v0 }
  0x2b   :  { %216 = vmatpush3.bf16.msra.mxu0 %v215_v19 }
  0x2c   :  { %217 = vmatprep.subr.bf16.mxu0 %v281_v0 }
  0x2f   :  { %219 = vmatpush3.bf16.msra.mxu0 %v218_v22 }
  0x30   :  { %220 = vmatprep.subr.bf16.mxu0 %v281_v0 }
  0x33   :  { %222 = vmatpush3.bf16.msra.mxu0 %v221_v25 }
  0x36   :  { %197 = vmatmul.mubr.f32.vlgmr.msra.gmra.mrb[0].mxu0 %v42_v26 }
 0x109   :  { %v125_v28 = vpop.f32.mrb[0].mxu0 }
 0x10a   :  { %v129_v29 = vadd.f32 %v146_v27, %v125_v28  ;;  %v198_v30 = vpop.f32.mrb[1].mxu0 }
 0x10c   :  { %130 = vst [vmem:[#allocation5] sm:$0xff] %v129_v29 }
 0x10d   :  { %263 = shalt.err (!%p260_p12)
}
 0x10e   :  { %s264_s6 = scalar_lea.hbm %s338_s3, 128 }
 0x10f   :  { %p265_p13 = scmp.ne.s32.totalorder %s338_s3, %s264_s6  ;;  %p268_p0 = scmp.lt.u32.totalorder %s264_s6, %s338_s3 }
 0x111   :  { %p270_p1 = pnand %p268_p0, %p265_p13 }
 0x113   :  { %273 = shalt.err (!%p270_p1)
}
 0x114   :  { %140 = dma.vmem_to_hbm [thread:$0]  %s138_s30, 128, %s338_s3, [#allocation4]  }
 0x115   :  { %276 = dma.done.wait [#allocation4], 128  }
 0x116   :  { %277 = vsyncadd [#allocation4], 4294967168 }
 0x117   :  { %144 = vsyncpa [#allocation3], 1 }
 0x118   :  { %145 = vsyncpa [#allocation4], 1 }

</bundles_post_ra>
